<compile_context>
chip_gen: v6e
topology: v6e:2x2x1
jax: 0.10.0
libtpu: 0.0.40
codegen_flags: <defaults>
</compile_context>

<pallas_src>
import functools
import math
import random

import numpy as np
import jax
import jax.numpy as jnp
from jax.experimental import pallas as pl
from jax.experimental.pallas import tpu as pltpu


# -----------------------------------------------------------------------------
# small helpers
# -----------------------------------------------------------------------------
def _round_up(x, m):
    return ((x + m - 1) // m) * m


def _sublane_multiple(dtype):
    # native sublane tiling: 8 rows for 4-byte, 16 for 2-byte, 32 for 1-byte
    return max(8, 32 // jnp.dtype(dtype).itemsize)


# -----------------------------------------------------------------------------
# host-side (numpy) interpolation weights / indices
# -----------------------------------------------------------------------------
def _bilinear_matrix(crop_start, crop_size, out_size, full_size):
    """(out_size, full_size) bilinear weights, half-pixel centers, antialias=False."""
    o = np.arange(out_size, dtype=np.float64)
    scale = crop_size / out_size
    src = np.clip((o + 0.5) * scale - 0.5, 0.0, float(crop_size - 1))
    i0 = np.floor(src).astype(np.int64)
    i1 = np.minimum(i0 + 1, crop_size - 1)
    f = (src - i0).astype(np.float32)
    m = np.zeros((out_size, full_size), np.float32)
    rows = np.arange(out_size)
    np.add.at(m, (rows, crop_start + i0), 1.0 - f)
    np.add.at(m, (rows, crop_start + i1), f)
    return m


def _nearest_matrix(crop_start, crop_size, out_size, full_size):
    """(out_size, full_size) one-hot nearest weights (torch 'nearest': floor)."""
    o = np.arange(out_size, dtype=np.float64)
    src = np.minimum(np.floor(o * (crop_size / out_size)).astype(np.int64),
                     crop_size - 1)
    m = np.zeros((out_size, full_size), np.float32)
    m[np.arange(out_size), crop_start + src] = 1.0
    return m


def _nearest_rows_index(crop_start, crop_size, out_size):
    """Absolute (full-image) nearest source-row index for each output row."""
    o = np.arange(out_size, dtype=np.float64)
    src = np.minimum(np.floor(o * (crop_size / out_size)).astype(np.int64),
                     crop_size - 1)
    return (crop_start + src).astype(np.int32)


# -----------------------------------------------------------------------------
# Pallas kernel: per image, bilinear image slab + nearest label slab
# -----------------------------------------------------------------------------
def _make_pair_kernel(C, CL, tile_h, W, out_h, out_wp, out_wpl,
                      compute_dtype, round_img):
    def kernel(rows_ref,                       # SMEM scalar prefetch (B*out_h,)
               wy_ref, wxt_ref, x_ref, wxtl_ref, lbl_ref,
               img_o_ref, lbl_o_ref,
               acc_ref, lrow_ref):
        b = pl.program_id(0)
        hb = pl.program_id(1)

        # ------------- image path: fused-channel matmuls, f32 H-accumulation
        @pl.when(hb == 0)
        def _init():
            acc_ref[...] = jnp.zeros_like(acc_ref)

        # Source tile is DMA'd in its own dtype and cast on the VPU here (no
        # extra HBM pass in the wrapper).  Channels fold into the row dim so
        # one matmul feeds the MXU with C*tile_h rows.
        x = x_ref[0].reshape(C * tile_h, W).astype(compute_dtype)
        t = jnp.dot(x, wxt_ref[0], preferred_element_type=jnp.float32)
        wy = wy_ref[0]                                   # (out_hp, tile_h)
        for c in range(C):   # small static loop; TODO(synk): fori_loop for big C
            tc = t[c * tile_h:(c + 1) * tile_h, :].astype(compute_dtype)
            acc_ref[:, c * out_wp:(c + 1) * out_wp] += jnp.dot(
                wy, tc, preferred_element_type=jnp.float32)

        @pl.when(hb == pl.num_programs(1) - 1)
        def _finalize():
            r = acc_ref[...]
            if round_img:                       # only for integer image dtypes
                r = jnp.round(r)
            img_o_ref[0] = r.astype(img_o_ref.dtype)

        # ------------- label path: nearest = row gather + tiny one-hot matmul
        # (label block is kept whole/resident across H tiles; labels are small)
        @pl.when(hb == 0)
        def _label():
            lrow_ref[...] = jnp.zeros_like(lrow_ref)

            @pl.loop(0, out_h)
            def _(r):
                ri = rows_ref[b * out_h + r]
                for cl in range(CL):
                    row = lbl_ref[0, cl, pl.ds(ri, 1), :].astype(jnp.float32)
                    lrow_ref[cl, pl.ds(r, 1), :] = row

            for cl in range(CL):
                res = jnp.dot(lrow_ref[cl], wxtl_ref[0],
                              preferred_element_type=jnp.float32)  # exact ints
                lbl_o_ref[0, :, cl * out_wpl:(cl + 1) * out_wpl] = res.astype(
                    lbl_o_ref.dtype)

    return kernel


# -----------------------------------------------------------------------------
# cached builder: pallas_call + jitted epilogue per static configuration
# -----------------------------------------------------------------------------
@functools.lru_cache(maxsize=None)
def _build_pair_fn(B, C, CL, H, W, out_h, out_w, out_hp, out_wp, tile_h_req,
                   img_dtype, lbl_dtype, compute_dtype):
    out_hlp = _round_up(out_h, _sublane_multiple(lbl_dtype))
    out_wpl = out_wp

    img_isz = jnp.dtype(img_dtype).itemsize
    lbl_isz = jnp.dtype(lbl_dtype).itemsize
    cmp_isz = jnp.dtype(compute_dtype).itemsize

    # ---- generation-aware VMEM budgeting + optional H-reduction tiling ------
    per_h = C * W * img_isz + out_hp * cmp_isz          # image tile + Wy tile
    fixed = (W * out_wp * cmp_isz                        # Wxt (bilinear cols)
             + W * out_wpl * 4                           # Wxt_label (one-hot)
             + CL * H * W * lbl_isz                      # label plane (whole)
             + out_hp * C * out_wp * img_isz             # image out slab
             + out_hlp * CL * out_wpl * lbl_isz)         # label out slab
    budget = 40 << 20   # stay well inside v7x's 64 MiB physical VMEM per core

    def need(th):
        return 2 * (per_h * th + fixed)                  # double-buffered

    if tile_h_req is None:
        tile_h = H
        if need(H) > budget:
            cands = [t for t in range(256, H, 256) if H % t == 0]
            if not cands:   # v5e MXU tile is 128; 128-multiples also fine there
                cands = [t for t in range(128, H, 128) if H % t == 0]
            ok = [t for t in cands if need(t) <= budget]
            if ok:
                tile_h = max(ok)
            elif cands:
                tile_h = min(cands)
    else:
        tile_h = int(tile_h_req)
        if H % tile_h != 0 or (tile_h != H and tile_h % 128 != 0):
            raise ValueError("tile_h must divide H and be a multiple of 128")
    n_h = H // tile_h

    scratch_bytes = out_hp * C * out_wp * 4 + CL * out_hlp * W * 4
    vmem_need = need(tile_h) + scratch_bytes + (2 << 20)
    vmem_limit = int(min(max(vmem_need, 4 << 20), 48 << 20))
    if vmem_need > (48 << 20):       # could not tile under the v7x-safe cap:
        vmem_limit = int(vmem_need)  # request what is needed (fine on v5e/v6e)

    round_img = bool(jnp.issubdtype(jnp.dtype(img_dtype), jnp.integer))
    kernel = _make_pair_kernel(C, CL, tile_h, W, out_h, out_wp, out_wpl,
                               compute_dtype, round_img)

    flops = 2 * B * (C * H * W * out_wp + C * out_hp * H * out_wp
                     + CL * out_h * W * out_wpl)
    bytes_acc = B * (C * H * W * img_isz + CL * H * W * lbl_isz
                     + out_hp * H * cmp_isz + W * out_wp * cmp_isz
                     + W * out_wpl * 4
                     + out_hp * C * out_wp * img_isz
                     + out_hlp * CL * out_wpl * lbl_isz)

    grid_spec = pltpu.PrefetchScalarGridSpec(
        num_scalar_prefetch=1,                 # nearest row indices -> SMEM
        grid=(B, n_h),
        in_specs=[
            pl.BlockSpec((1, out_hp, tile_h), lambda b, h, rows: (b, 0, h)),
            pl.BlockSpec((1, W, out_wp), lambda b, h, rows: (b, 0, 0)),
            pl.BlockSpec((1, C, tile_h, W), lambda b, h, rows: (b, 0, h, 0)),
            pl.BlockSpec((1, W, out_wpl), lambda b, h, rows: (b, 0, 0)),
            pl.BlockSpec((1, CL, H, W), lambda b, h, rows: (b, 0, 0, 0)),
        ],
        out_specs=(
            pl.BlockSpec((1, out_hp, C * out_wp), lambda b, h, rows: (b, 0, 0)),
            pl.BlockSpec((1, out_hlp, CL * out_wpl),
                         lambda b, h, rows: (b, 0, 0)),
        ),
        scratch_shapes=[
            pltpu.VMEM((out_hp, C * out_wp), jnp.float32),   # image accumulator
            pltpu.VMEM((CL, out_hlp, W), jnp.float32),       # gathered lbl rows
        ],
    )

    call = pl.pallas_call(
        kernel,
        out_shape=(jax.ShapeDtypeStruct((B, out_hp, C * out_wp), img_dtype),
                   jax.ShapeDtypeStruct((B, out_hlp, CL * out_wpl), lbl_dtype)),
        grid_spec=grid_spec,
        compiler_params=pltpu.CompilerParams(
            # TODO(synk): for B == 1 on v7x (2 TensorCores) a second parallel
            # axis over channel chunks would occupy both cores; skipped here to
            # keep the resident label output single-writer.
            dimension_semantics=("parallel", "arbitrary"),
            vmem_limit_bytes=vmem_limit),
        cost_estimate=pl.CostEstimate(flops=flops, transcendentals=0,
                                      bytes_accessed=bytes_acc),
    )

    def run(rows_idx, wy, wxt, x, wxtl, lbl):
        raw_img, raw_lbl = call(rows_idx, wy, wxt, x, wxtl, lbl)
        img = raw_img[:, :out_h, :].reshape(B, out_h, C, out_wp)[..., :out_w]
        lab = raw_lbl[:, :out_h, :].reshape(B, out_h, CL, out_wpl)[..., :out_w]
        return (jnp.transpose(img, (0, 2, 1, 3)),
                jnp.transpose(lab, (0, 2, 1, 3)))

    return jax.jit(run)


# -----------------------------------------------------------------------------
# public wrapper: batched resized-crop of (image, label) pairs
# -----------------------------------------------------------------------------
def resized_crop_pair(imgs, lbls, crops, size, *,
                      compute_dtype=jnp.bfloat16, tile_h=None):
    """imgs: (B, C, H, W), lbls: (B, CL, H, W), crops: sequence of (i, j, h, w).
    Returns bilinear-resized crops of imgs and nearest-resized crops of lbls,
    each (B, C[, CL], out_h, out_w) in the input dtypes."""
    imgs = jnp.asarray(imgs)
    lbls = jnp.asarray(lbls)
    B, C, H, W = imgs.shape
    CL = lbls.shape[1]
    assert lbls.shape[0] == B and lbls.shape[2:] == (H, W)
    assert len(crops) == B
    if isinstance(size, (int, np.integer)):
        out_h, out_w = int(size), int(size)
    else:
        out_h, out_w = int(size[0]), int(size[1])

    img_dt = jnp.dtype(imgs.dtype)
    lbl_dt = jnp.dtype(lbls.dtype)
    cmp_dt = jnp.dtype(compute_dtype)

    out_hp = _round_up(out_h, max(_sublane_multiple(img_dt),
                                  _sublane_multiple(cmp_dt)))
    out_wp = _round_up(out_w, 128)

    # per-crop weights, built on host directly in the dtype the MXU will see
    wy = np.zeros((B, out_hp, H), np.float32)
    wxt = np.zeros((B, W, out_wp), np.float32)
    wxtl = np.zeros((B, W, out_wp), np.float32)
    rows = np.zeros((B, out_h), np.int32)
    for b, (ci, cj, ch, cw) in enumerate(crops):
        wy[b, :out_h, :] = _bilinear_matrix(ci, ch, out_h, H)
        wxt[b, :, :out_w] = _bilinear_matrix(cj, cw, out_w, W).T
        wxtl[b, :, :out_w] = _nearest_matrix(cj, cw, out_w, W).T
        rows[b] = _nearest_rows_index(ci, ch, out_h)

    fn = _build_pair_fn(B, C, CL, H, W, out_h, out_w, out_hp, out_wp, tile_h,
                        img_dt, lbl_dt, cmp_dt)
    return fn(rows.reshape(-1), wy.astype(cmp_dt), wxt.astype(cmp_dt),
              imgs, wxtl, lbls)


# -----------------------------------------------------------------------------
# Module equivalent
# -----------------------------------------------------------------------------
class ExtRandomResizedCropPallas:
    def __init__(self, size, scale=(0.08, 1.0), ratio=(3.0 / 4.0, 4.0 / 3.0),
                 seed=0, compute_dtype=jnp.bfloat16):
        if isinstance(size, (int, float)):
            self.size = (int(size), int(size))
        else:
            self.size = tuple(size)
        self.scale = scale
        self.ratio = ratio
        self.compute_dtype = compute_dtype
        self._rng = random.Random(seed)    # deterministic crop sampling

    # TODO(synk): crop-parameter sampling (get_params) stays host-side; it is
    # RNG / control-flow glue with no meaningful Pallas hot path.
    def get_params(self, height, width):
        area = height * width
        log_ratio = (math.log(self.ratio[0]), math.log(self.ratio[1]))
        for _ in range(10):
            target_area = area * self._rng.uniform(self.scale[0], self.scale[1])
            aspect_ratio = math.exp(self._rng.uniform(log_ratio[0], log_ratio[1]))
            w = int(round(math.sqrt(target_area * aspect_ratio)))
            h = int(round(math.sqrt(target_area / aspect_ratio)))
            if 0 < w <= width and 0 < h <= height:
                i = self._rng.randint(0, height - h)
                j = self._rng.randint(0, width - w)
                return i, j, h, w
        # fallback to central crop
        in_ratio = float(width) / float(height)
        if in_ratio < min(self.ratio):
            w = width
            h = int(round(w / min(self.ratio)))
        elif in_ratio > max(self.ratio):
            h = height
            w = int(round(h * max(self.ratio)))
        else:
            w = width
            h = height
        i = (height - h) // 2
        j = (width - w) // 2
        return i, j, h, w

    def __call__(self, img, lbl):
        """img: (C, H, W) float, lbl: (CL, H, W) int -> resized-crop pair."""
        img = jnp.asarray(img)
        lbl = jnp.asarray(lbl)
        _, H, W = img.shape
        i, j, h, w = self.get_params(H, W)
        img_out, lbl_out = resized_crop_pair(
            img[None], lbl[None], [(i, j, h, w)], self.size,
            compute_dtype=self.compute_dtype)
        return img_out[0], lbl_out[0]


# -----------------------------------------------------------------------------
# numpy reference (same math: bilinear weights, nearest floor indices)
# -----------------------------------------------------------------------------
def _ref_pair(img_np, lbl_np, crop, out_h, out_w):
    i, j, h, w = crop
    _, H, W = img_np.shape
    wy = _bilinear_matrix(i, h, out_h, H)
    wxt = _bilinear_matrix(j, w, out_w, W).T
    img_ref = np.einsum("oh,chw,wx->cox", wy, img_np.astype(np.float32), wxt)
    rows = np.minimum(np.floor(np.arange(out_h) * (h / out_h)).astype(np.int64),
                      h - 1) + i
    cols = np.minimum(np.floor(np.arange(out_w) * (w / out_w)).astype(np.int64),
                      w - 1) + j
    lbl_ref = lbl_np[:, rows][:, :, cols]
    return img_ref, lbl_ref


# -----------------------------------------------------------------------------
if __name__ == "__main__":
    key = jax.random.PRNGKey(0)
    k1, k2, k3, k4, k5, k6 = jax.random.split(key, 6)

    # ---- 1) module path: single (img, lbl) pair, 16x16 -> 8x8 ----
    C, H, W, out_s = 3, 16, 16, 8
    img = jax.random.normal(k1, (C, H, W), dtype=jnp.float32)
    lbl = jax.random.randint(k2, (1, H, W), 0, 21, dtype=jnp.int32)

    op = ExtRandomResizedCropPallas(size=out_s, seed=0)
    img_out, lbl_out = op(img, lbl)
    img_out = jax.block_until_ready(img_out)
    lbl_out = jax.block_until_ready(lbl_out)
    assert img_out.shape == (C, out_s, out_s) and img_out.dtype == img.dtype
    assert lbl_out.shape == (1, out_s, out_s) and lbl_out.dtype == lbl.dtype

    crop = ExtRandomResizedCropPallas(size=out_s, seed=0).get_params(H, W)
    img_ref, lbl_ref = _ref_pair(np.asarray(img), np.asarray(lbl), crop,
                                 out_s, out_s)
    np.testing.assert_allclose(np.asarray(img_out, np.float32), img_ref,
                               rtol=5e-2, atol=5e-2)      # bf16-operand tol
    np.testing.assert_array_equal(np.asarray(lbl_out), lbl_ref)  # exact labels

    # ---- 2) batched pipeline use: B pairs, per-image crops, one pallas_call ---
    B, C2 = 2, 4
    imgs = jax.random.normal(k3, (B, C2, H, W), dtype=jnp.float32)
    lbls = jax.random.randint(k4, (B, 1, H, W), 0, 21, dtype=jnp.int32)
    crops = [(2, 3, 10, 12), (0, 1, 14, 8)]               # (i, j, h, w)
    img_b, lbl_b = resized_crop_pair(imgs, lbls, crops, out_s)
    img_b = jax.block_until_ready(img_b)
    lbl_b = jax.block_until_ready(lbl_b)
    for b in range(B):
        ir, lr = _ref_pair(np.asarray(imgs[b]), np.asarray(lbls[b]), crops[b],
                           out_s, out_s)
        np.testing.assert_allclose(np.asarray(img_b[b], np.float32), ir,
                                   rtol=5e-2, atol=5e-2)
        np.testing.assert_array_equal(np.asarray(lbl_b[b]), lr)

    # ---- 3) H-reduction tiling path (2 h-tiles through the f32 accumulator) --
    C3, H3, W3, out3 = 3, 256, 128, 32
    img3 = jax.random.normal(k5, (1, C3, H3, W3), dtype=jnp.float32)
    lbl3 = jax.random.randint(k6, (1, 1, H3, W3), 0, 21, dtype=jnp.int32)
    crop3 = (17, 9, 200, 100)
    img_t, lbl_t = resized_crop_pair(img3, lbl3, [crop3], out3, tile_h=128)
    img_t = jax.block_until_ready(img_t)
    lbl_t = jax.block_until_ready(lbl_t)
    ir3, lr3 = _ref_pair(np.asarray(img3[0]), np.asarray(lbl3[0]), crop3,
                         out3, out3)
    np.testing.assert_allclose(np.asarray(img_t[0], np.float32), ir3,
                               rtol=5e-2, atol=5e-2)
    np.testing.assert_array_equal(np.asarray(lbl_t[0]), lr3)

    print("KERNEL_OK")
</pallas_src>

<mosaic_0001>
module attributes {stable_mosaic.version = 11 : i64} {
  func.func @kernel(%arg0: i32, %arg1: i32, %arg2: memref<8xi32, #tpu.memory_space<smem>>, %arg3: memref<1x16x16xbf16, #tpu.memory_space<vmem>>, %arg4: memref<1x16x128xbf16, #tpu.memory_space<vmem>>, %arg5: memref<1x3x16x16xf32, #tpu.memory_space<vmem>>, %arg6: memref<1x16x128xf32, #tpu.memory_space<vmem>>, %arg7: memref<1x1x16x16xi32, #tpu.memory_space<vmem>>, %arg8: memref<1x16x384xf32, #tpu.memory_space<vmem>>, %arg9: memref<1x8x128xi32, #tpu.memory_space<vmem>>, %arg10: memref<16x384xf32, #tpu.memory_space<vmem>>, %arg11: memref<1x8x16xf32, #tpu.memory_space<vmem>>) attributes {dimension_semantics = [#tpu.dimension_semantics<parallel>, #tpu.dimension_semantics<arbitrary>], iteration_bounds = array<i64: 1, 1>, scalar_prefetch = 1 : i64, scratch_operands = 2 : i64, tpu.core_type = #tpu.core_type<tc>, window_params = [{transform_indices = @transform_0, window_bounds = array<i64: 1, 16, 16>}, {transform_indices = @transform_1, window_bounds = array<i64: 1, 16, 128>}, {transform_indices = @transform_2, window_bounds = array<i64: 1, 3, 16, 16>}, {transform_indices = @transform_3, window_bounds = array<i64: 1, 16, 128>}, {transform_indices = @transform_4, window_bounds = array<i64: 1, 1, 16, 16>}, {transform_indices = @transform_5, window_bounds = array<i64: 1, 16, 384>}, {transform_indices = @transform_6, window_bounds = array<i64: 1, 8, 128>}]} {
    %c0_i32 = arith.constant 0 : i32
    %0 = arith.cmpi eq, %arg1, %c0_i32 : i32
    %1 = arith.extui %0 : i1 to i32
    %c0_i32_0 = arith.constant 0 : i32
    %2 = arith.cmpi ne, %1, %c0_i32_0 : i32
    scf.if %2 {
      %cst_27 = arith.constant 0.000000e+00 : f32
      %36 = vector.broadcast %cst_27 : f32 to vector<16x384xf32>
      %c0_28 = arith.constant 0 : index
      %c0_29 = arith.constant 0 : index
      %37 = vector.load %arg10[%c0_28, %c0_29] : memref<16x384xf32, #tpu.memory_space<vmem>>, vector<16x384xf32>
      tpu.vector_store %arg10[%c0_28, %c0_29], %36 {strides = array<i32>} : memref<16x384xf32, #tpu.memory_space<vmem>>, vector<16x384xf32>,
    } else {
    }
    %c0 = arith.constant 0 : index
    %c0_1 = arith.constant 0 : index
    %c0_2 = arith.constant 0 : index
    %c0_3 = arith.constant 0 : index
    %3 = vector.load %arg5[%c0, %c0_1, %c0_2, %c0_3] : memref<1x3x16x16xf32, #tpu.memory_space<vmem>>, vector<1x3x16x16xf32>
    %4 = vector.shape_cast %3 : vector<1x3x16x16xf32> to vector<3x16x16xf32>
    %5 = vector.shape_cast %4 : vector<3x16x16xf32> to vector<48x16xf32>
    %6 = arith.truncf %5 : vector<48x16xf32> to vector<48x16xbf16>
    %c0_4 = arith.constant 0 : index
    %c0_5 = arith.constant 0 : index
    %c0_6 = arith.constant 0 : index
    %7 = vector.load %arg4[%c0_4, %c0_5, %c0_6] : memref<1x16x128xbf16, #tpu.memory_space<vmem>>, vector<1x16x128xbf16>
    %8 = vector.shape_cast %7 : vector<1x16x128xbf16> to vector<16x128xbf16>
    %cst = arith.constant dense<0.000000e+00> : vector<48x128xf32>
    %9 = tpu.matmul %6, %8, %cst {dimension_numbers = #tpu.dot_dimension_numbers<[1], [0], [0], [1], [0, 0, 1, 1], [], []>} : vector<48x16xbf16>, vector<16x128xbf16>, vector<48x128xf32> -> vector<48x128xf32>
    %c0_7 = arith.constant 0 : index
    %c0_8 = arith.constant 0 : index
    %c0_9 = arith.constant 0 : index
    %10 = vector.load %arg3[%c0_7, %c0_8, %c0_9] : memref<1x16x16xbf16, #tpu.memory_space<vmem>>, vector<1x16x16xbf16>
    %11 = vector.shape_cast %10 : vector<1x16x16xbf16> to vector<16x16xbf16>
    %12 = vector.extract_strided_slice %9 {offsets = [0, 0], sizes = [16, 128], strides = [1, 1]} : vector<48x128xf32> to vector<16x128xf32>
    %13 = arith.truncf %12 : vector<16x128xf32> to vector<16x128xbf16>
    %c0_10 = arith.constant 0 : index
    %c0_11 = arith.constant 0 : index
    %14 = vector.load %arg10[%c0_10, %c0_11] : memref<16x384xf32, #tpu.memory_space<vmem>>, vector<16x128xf32>
    %cst_12 = arith.constant dense<0.000000e+00> : vector<16x128xf32>
    %15 = tpu.matmul %11, %13, %cst_12 {dimension_numbers = #tpu.dot_dimension_numbers<[1], [0], [0], [1], [0, 0, 1, 1], [], []>} : vector<16x16xbf16>, vector<16x128xbf16>, vector<16x128xf32> -> vector<16x128xf32>
    %16 = arith.addf %14, %15 : vector<16x128xf32>
    %c0_13 = arith.constant 0 : index
    %c0_14 = arith.constant 0 : index
    %17 = vector.load %arg10[%c0_13, %c0_14] : memref<16x384xf32, #tpu.memory_space<vmem>>, vector<16x128xf32>
    tpu.vector_store %arg10[%c0_13, %c0_14], %16 {strides = array<i32>} : memref<16x384xf32, #tpu.memory_space<vmem>>, vector<16x128xf32>,
    %18 = vector.extract_strided_slice %9 {offsets = [16, 0], sizes = [16, 128], strides = [1, 1]} : vector<48x128xf32> to vector<16x128xf32>
    %19 = arith.truncf %18 : vector<16x128xf32> to vector<16x128xbf16>
    %c0_15 = arith.constant 0 : index
    %c128 = arith.constant 128 : index
    %20 = vector.load %arg10[%c0_15, %c128] : memref<16x384xf32, #tpu.memory_space<vmem>>, vector<16x128xf32>
    %cst_16 = arith.constant dense<0.000000e+00> : vector<16x128xf32>
    %21 = tpu.matmul %11, %19, %cst_16 {dimension_numbers = #tpu.dot_dimension_numbers<[1], [0], [0], [1], [0, 0, 1, 1], [], []>} : vector<16x16xbf16>, vector<16x128xbf16>, vector<16x128xf32> -> vector<16x128xf32>
    %22 = arith.addf %20, %21 : vector<16x128xf32>
    %c0_17 = arith.constant 0 : index
    %c128_18 = arith.constant 128 : index
    %23 = vector.load %arg10[%c0_17, %c128_18] : memref<16x384xf32, #tpu.memory_space<vmem>>, vector<16x128xf32>
    tpu.vector_store %arg10[%c0_17, %c128_18], %22 {strides = array<i32>} : memref<16x384xf32, #tpu.memory_space<vmem>>, vector<16x128xf32>,
    %24 = vector.extract_strided_slice %9 {offsets = [32, 0], sizes = [16, 128], strides = [1, 1]} : vector<48x128xf32> to vector<16x128xf32>
    %25 = arith.truncf %24 : vector<16x128xf32> to vector<16x128xbf16>
    %c0_19 = arith.constant 0 : index
    %c256 = arith.constant 256 : index
    %26 = vector.load %arg10[%c0_19, %c256] : memref<16x384xf32, #tpu.memory_space<vmem>>, vector<16x128xf32>
    %cst_20 = arith.constant dense<0.000000e+00> : vector<16x128xf32>
    %27 = tpu.matmul %11, %25, %cst_20 {dimension_numbers = #tpu.dot_dimension_numbers<[1], [0], [0], [1], [0, 0, 1, 1], [], []>} : vector<16x16xbf16>, vector<16x128xbf16>, vector<16x128xf32> -> vector<16x128xf32>
    %28 = arith.addf %26, %27 : vector<16x128xf32>
    %c0_21 = arith.constant 0 : index
    %c256_22 = arith.constant 256 : index
    %29 = vector.load %arg10[%c0_21, %c256_22] : memref<16x384xf32, #tpu.memory_space<vmem>>, vector<16x128xf32>
    tpu.vector_store %arg10[%c0_21, %c256_22], %28 {strides = array<i32>} : memref<16x384xf32, #tpu.memory_space<vmem>>, vector<16x128xf32>,
    %c0_i32_23 = arith.constant 0 : i32
    %30 = arith.cmpi eq, %arg1, %c0_i32_23 : i32
    %31 = arith.extui %30 : i1 to i32
    %c0_i32_24 = arith.constant 0 : i32
    %32 = arith.cmpi ne, %31, %c0_i32_24 : i32
    scf.if %32 {
      %c0_27 = arith.constant 0 : index
      %c0_28 = arith.constant 0 : index
      %36 = vector.load %arg10[%c0_27, %c0_28] : memref<16x384xf32, #tpu.memory_space<vmem>>, vector<16x384xf32>
      %c0_29 = arith.constant 0 : index
      %c0_30 = arith.constant 0 : index
      %c0_31 = arith.constant 0 : index
      %37 = vector.load %arg8[%c0_29, %c0_30, %c0_31] : memref<1x16x384xf32, #tpu.memory_space<vmem>>, vector<1x16x384xf32>
      %38 = vector.shape_cast %37 : vector<1x16x384xf32> to vector<16x384xf32>
      %39 = vector.shape_cast %36 : vector<16x384xf32> to vector<1x16x384xf32>
      tpu.vector_store %arg8[%c0_29, %c0_30, %c0_31], %39 {strides = array<i32>} : memref<1x16x384xf32, #tpu.memory_space<vmem>>, vector<1x16x384xf32>,
    } else {
    }
    %c0_i32_25 = arith.constant 0 : i32
    %33 = arith.cmpi eq, %arg1, %c0_i32_25 : i32
    %34 = arith.extui %33 : i1 to i32
    %c0_i32_26 = arith.constant 0 : i32
    %35 = arith.cmpi ne, %34, %c0_i32_26 : i32
    scf.if %35 {
      %cst_27 = arith.constant 0.000000e+00 : f32
      %36 = vector.broadcast %cst_27 : f32 to vector<1x8x16xf32>
      %c0_28 = arith.constant 0 : index
      %c0_29 = arith.constant 0 : index
      %c0_30 = arith.constant 0 : index
      %37 = vector.load %arg11[%c0_28, %c0_29, %c0_30] : memref<1x8x16xf32, #tpu.memory_space<vmem>>, vector<1x8x16xf32>
      tpu.vector_store %arg11[%c0_28, %c0_29, %c0_30], %36 {strides = array<i32>} : memref<1x8x16xf32, #tpu.memory_space<vmem>>, vector<1x8x16xf32>,
      %c0_i32_31 = arith.constant 0 : i32
      %c8_i32 = arith.constant 8 : i32
      %38 = arith.addi %c0_i32_31, %c8_i32 : i32
      %c1_i32 = arith.constant 1 : i32
      scf.for %arg12 = %c0_i32_31 to %38 step %c1_i32  : i32 {
        %c1_i32_43 = arith.constant 1 : i32
        %48 = arith.muli %arg12, %c1_i32_43 : i32
        %c0_i32_44 = arith.constant 0 : i32
        %49 = arith.addi %c0_i32_44, %48 : i32
        %c8_i32_45 = arith.constant 8 : i32
        %50 = arith.muli %arg0, %c8_i32_45 : i32
        %51 = arith.addi %50, %49 : i32
        %52 = arith.index_cast %51 : i32 to index
        %53 = memref.load %arg2[%52] : memref<8xi32, #tpu.memory_space<smem>>
        %c0_46 = arith.constant 0 : index
        %c0_47 = arith.constant 0 : index
        %54 = arith.index_cast %53 : i32 to index
        %c0_48 = arith.constant 0 : index
        %55 = vector.load %arg7[%c0_46, %c0_47, %54, %c0_48] : memref<1x1x16x16xi32, #tpu.memory_space<vmem>>, vector<1x1x1x16xi32>
        %56 = vector.shape_cast %55 : vector<1x1x1x16xi32> to vector<1x16xi32>
        %57 = arith.sitofp %56 : vector<1x16xi32> to vector<1x16xf32>
        %c0_49 = arith.constant 0 : index
        %58 = arith.index_cast %49 : i32 to index
        %c0_50 = arith.constant 0 : index
        %59 = vector.load %arg11[%c0_49, %58, %c0_50] : memref<1x8x16xf32, #tpu.memory_space<vmem>>, vector<1x1x16xf32>
        %60 = vector.shape_cast %59 : vector<1x1x16xf32> to vector<1x16xf32>
        %61 = vector.shape_cast %57 : vector<1x16xf32> to vector<1x1x16xf32>
        tpu.vector_store %arg11[%c0_49, %58, %c0_50], %61 {strides = array<i32>} : memref<1x8x16xf32, #tpu.memory_space<vmem>>, vector<1x1x16xf32>,
      }
      %c8_i32_32 = arith.constant 8 : i32
      %c0_33 = arith.constant 0 : index
      %c0_34 = arith.constant 0 : index
      %c0_35 = arith.constant 0 : index
      %39 = vector.load %arg11[%c0_33, %c0_34, %c0_35] : memref<1x8x16xf32, #tpu.memory_space<vmem>>, vector<1x8x16xf32>
      %40 = vector.shape_cast %39 : vector<1x8x16xf32> to vector<8x16xf32>
      %c0_36 = arith.constant 0 : index
      %c0_37 = arith.constant 0 : index
      %c0_38 = arith.constant 0 : index
      %41 = vector.load %arg6[%c0_36, %c0_37, %c0_38] : memref<1x16x128xf32, #tpu.memory_space<vmem>>, vector<1x16x128xf32>
      %42 = vector.shape_cast %41 : vector<1x16x128xf32> to vector<16x128xf32>
      %cst_39 = arith.constant dense<0.000000e+00> : vector<8x128xf32>
      %43 = tpu.matmul %40, %42, %cst_39 {dimension_numbers = #tpu.dot_dimension_numbers<[1], [0], [0], [1], [0, 0, 1, 1], [], []>} : vector<8x16xf32>, vector<16x128xf32>, vector<8x128xf32> -> vector<8x128xf32>
      %44 = arith.fptosi %43 : vector<8x128xf32> to vector<8x128xi32>
      %c0_40 = arith.constant 0 : index
      %c0_41 = arith.constant 0 : index
      %c0_42 = arith.constant 0 : index
      %45 = vector.load %arg9[%c0_40, %c0_41, %c0_42] : memref<1x8x128xi32, #tpu.memory_space<vmem>>, vector<1x8x128xi32>
      %46 = vector.shape_cast %45 : vector<1x8x128xi32> to vector<8x128xi32>
      %47 = vector.shape_cast %44 : vector<8x128xi32> to vector<1x8x128xi32>
      tpu.vector_store %arg9[%c0_40, %c0_41, %c0_42], %47 {strides = array<i32>} : memref<1x8x128xi32, #tpu.memory_space<vmem>>, vector<1x8x128xi32>,
    } else {
    }
    return
  }
  func.func @transform_0(%arg0: i32, %arg1: i32, %arg2: memref<8xi32, #tpu.memory_space<smem>>) -> (i32, i32, i32) {
    %c0_i32 = arith.constant 0 : i32
    %c0_i32_0 = arith.constant 0 : i32
    return %arg0, %c0_i32, %arg1 : i32, i32, i32
  }
  func.func @transform_1(%arg0: i32, %arg1: i32, %arg2: memref<8xi32, #tpu.memory_space<smem>>) -> (i32, i32, i32) {
    %c0_i32 = arith.constant 0 : i32
    %c0_i32_0 = arith.constant 0 : i32
    %c0_i32_1 = arith.constant 0 : i32
    return %arg0, %c0_i32, %c0_i32_0 : i32, i32, i32
  }
  func.func @transform_2(%arg0: i32, %arg1: i32, %arg2: memref<8xi32, #tpu.memory_space<smem>>) -> (i32, i32, i32, i32) {
    %c0_i32 = arith.constant 0 : i32
    %c0_i32_0 = arith.constant 0 : i32
    %c0_i32_1 = arith.constant 0 : i32
    return %arg0, %c0_i32, %arg1, %c0_i32_0 : i32, i32, i32, i32
  }
  func.func @transform_3(%arg0: i32, %arg1: i32, %arg2: memref<8xi32, #tpu.memory_space<smem>>) -> (i32, i32, i32) {
    %c0_i32 = arith.constant 0 : i32
    %c0_i32_0 = arith.constant 0 : i32
    %c0_i32_1 = arith.constant 0 : i32
    return %arg0, %c0_i32, %c0_i32_0 : i32, i32, i32
  }
  func.func @transform_4(%arg0: i32, %arg1: i32, %arg2: memref<8xi32, #tpu.memory_space<smem>>) -> (i32, i32, i32, i32) {
    %c0_i32 = arith.constant 0 : i32
    %c0_i32_0 = arith.constant 0 : i32
    %c0_i32_1 = arith.constant 0 : i32
    %c0_i32_2 = arith.constant 0 : i32
    return %arg0, %c0_i32, %c0_i32_0, %c0_i32_1 : i32, i32, i32, i32
  }
  func.func @transform_5(%arg0: i32, %arg1: i32, %arg2: memref<8xi32, #tpu.memory_space<smem>>) -> (i32, i32, i32) {
    %c0_i32 = arith.constant 0 : i32
    %c0_i32_0 = arith.constant 0 : i32
    %c0_i32_1 = arith.constant 0 : i32
    return %arg0, %c0_i32, %c0_i32_0 : i32, i32, i32
  }
  func.func @transform_6(%arg0: i32, %arg1: i32, %arg2: memref<8xi32, #tpu.memory_space<smem>>) -> (i32, i32, i32) {
    %c0_i32 = arith.constant 0 : i32
    %c0_i32_0 = arith.constant 0 : i32
    %c0_i32_1 = arith.constant 0 : i32
    return %arg0, %c0_i32, %c0_i32_0 : i32, i32, i32
  }
}

</mosaic_0001>

<bundles_post_ra>
// kernel: run.1
= control target key start
LH: loop header
LB: loop body
LE: loop exit
PB: predicated region body
PF: predicated region fallthrough
CT: control target
= control target key end

     0   :  { %s680_s24 = smov [#allocation5]   ;;  %s809_s0 = inlined_call_operand.hbm [shape: s32[8], index: 0, kind: input, shape index: {}]   ;;  %s810_s1 = inlined_call_operand.hbm [shape: bf16[1,16,16], index: 1, kind: input, shape index: {}]   ;;  %s811_s2 = inlined_call_operand.hbm [shape: bf16[1,16,128], index: 2, kind: input, shape index: {}]   ;;  %s812_s3 = inlined_call_operand.hbm [shape: f32[1,3,16,16], index: 3, kind: input, shape index: {}]   ;;  %s813_s4 = inlined_call_operand.hbm [shape: f32[1,16,128], index: 4, kind: input, shape index: {}]   ;;  %s814_s5 = inlined_call_operand.hbm [shape: s32[1,1,16,16], index: 5, kind: input, shape index: {}]   ;;  %s815_s6 = inlined_call_operand.vmem [shape: f32[1,16,384], index: 6, kind: output, shape index: {0}]   ;;  %s816_s7 = inlined_call_operand.vmem [shape: s32[1,8,128], index: 7, kind: output, shape index: {1}]  }
   0x1   :  { %14 = dma.hbm_to_smem %s809_s0, 16, %s680_s24, [#allocation4] }
   0x2   :  { %668 = dma.done.wait [#allocation4], 16 }
   0x3   :  { %669 = vsyncadd [#allocation4], 4294967280 }
   0x4   :  { %16 = sfence }
   0x5   :  { %17 = vsyncpa [#allocation7], 0 }
   0x6   :  { %18 = vsyncpa [#allocation9], 0 }
   0x7   :  { %19 = vsyncpa [#allocation12], 0  ;;  %s681_s27 = smov [#allocation8]  }
   0x8   :  { %s37_s28 = sshll.u32 %s681_s27, 4  ;;  %s38_s28 = int_to_ptr.vmem [resolvable:$true] %s37_s28 }
   0x9   :  { %s572_s29 = scalar_lea.vmem %s38_s28, 128  ;;  %p577_p1 = scmp.lt.s32.totalorder %s38_s28, %s38_s28 }
   0xa   :  { %p573_p0 = scmp.ne.s32.totalorder %s38_s28, %s572_s29  ;;  %p578_p2 = scmp.lt.s32.totalorder %s572_s29, %s572_s29 }
   0xc   :  { %p579_p3 = por %p578_p2, %p577_p1 }
   0xe   :  { %p580_p4 = pnand %p579_p3, %p573_p0 }
  0x10   :  { %583 = shalt.err (!%p580_p4)
}
  0x11   :  { %s682_s30 = smov 64   ;;  %s683_s8 = smov 4  }
  0x12   :  { %43 = dma.hbm_to_vmem [thread:$0]  %s811_s2, 128, %s38_s28, [#allocation9], %s682_s30, %s682_s30, %s683_s8  }
  0x13   :  { %s684_s10 = smov [#allocation11]   ;;  %s685_s12 = smov [#allocation6]  }
  0x14   :  { %s61_s11 = sshll.u32 %s684_s10, 4  ;;  %s25_s13 = sshll.u32 %s685_s12, 4  ;;  %s62_s11 = int_to_ptr.vmem [resolvable:$true] %s61_s11  ;;  %s26_s13 = int_to_ptr.vmem [resolvable:$true] %s25_s13 }
  0x15   :  { %s592_s14 = scalar_lea.vmem %s62_s11, 256  ;;  %p597_p6 = scmp.lt.s32.totalorder %s62_s11, %s62_s11 }
  0x16   :  { %p593_p5 = scmp.ne.s32.totalorder %s62_s11, %s592_s14  ;;  %p598_p7 = scmp.lt.s32.totalorder %s592_s14, %s592_s14 }
  0x18   :  { %p599_p8 = por %p598_p7, %p597_p6 }
  0x1a   :  { %p600_p9 = pnand %p599_p8, %p593_p5 }
  0x1c   :  { %603 = shalt.err (!%p600_p9)
}
  0x1d   :  { %s686_s15 = smov 128   ;;  %s687_s16 = smov 8  }
  0x1e   :  { %67 = dma.hbm_to_vmem [thread:$0]  %s813_s4, 256, %s62_s11, [#allocation12], %s686_s15, %s686_s15, %s687_s16  }
  0x1f   :  { %s612_s2 = scalar_lea.vmem %s26_s13, 128  ;;  %p617_p11 = scmp.lt.s32.totalorder %s26_s13, %s26_s13 }
  0x20   :  { %p613_p10 = scmp.ne.s32.totalorder %s26_s13, %s612_s2  ;;  %p618_p12 = scmp.lt.s32.totalorder %s612_s2, %s612_s2 }
  0x22   :  { %p619_p13 = por %p618_p12, %p617_p11 }
  0x24   :  { %p620_p0 = pnand %p619_p13, %p613_p10 }
  0x26   :  { %623 = shalt.err (!%p620_p0)
}
  0x27   :  { %31 = dma.hbm_to_vmem [thread:$0]  %s810_s1, 128, %s26_s13, [#allocation7], %s682_s30, %s682_s30, %s683_s8  }
  0x28   :  { %s688_s21 = smov [#allocation10]   ;;  %s689_s23 = smov [#allocation13]  }
  0x29   :  { %s49_s22 = sshll.u32 %s688_s21, 4  ;;  %s73_s24 = sshll.u32 %s689_s23, 4  ;;  %s50_s22 = int_to_ptr.vmem [resolvable:$true] %s49_s22  ;;  %s74_s24 = int_to_ptr.vmem [resolvable:$true] %s73_s24 }
  0x2a   :  { %s632_s25 = scalar_lea.vmem %s50_s22, 768  ;;  %p637_p2 = scmp.lt.s32.totalorder %s50_s22, %s50_s22 }
  0x2b   :  { %p633_p1 = scmp.ne.s32.totalorder %s50_s22, %s632_s25  ;;  %p638_p3 = scmp.lt.s32.totalorder %s632_s25, %s632_s25 }
  0x2d   :  { %p639_p4 = por %p638_p3, %p637_p2 }
  0x2f   :  { %p640_p5 = pnand %p639_p4, %p633_p1 }
  0x31   :  { %643 = shalt.err (!%p640_p5)
}
  0x32   :  { %55 = dma.hbm_to_vmem [thread:$0]  %s812_s3, 768, %s50_s22, [#allocation9], %s686_s15, %s686_s15, %s687_s16  }
  0x33   :  { %s652_s1 = scalar_lea.vmem %s74_s24, 256  ;;  %p657_p7 = scmp.lt.s32.totalorder %s74_s24, %s74_s24 }
  0x34   :  { %p653_p6 = scmp.ne.s32.totalorder %s74_s24, %s652_s1  ;;  %p658_p8 = scmp.lt.s32.totalorder %s652_s1, %s652_s1 }
  0x36   :  { %p659_p9 = por %p658_p8, %p657_p7 }
  0x38   :  { %p660_p10 = pnand %p659_p9, %p653_p6 }
  0x3a   :  { %663 = shalt.err (!%p660_p10)
}
  0x3b   :  { %79 = dma.hbm_to_vmem [thread:$0]  %s814_s5, 256, %s74_s24, [#allocation12], %s686_s15, %s686_s15, %s687_s16  }
  0x3c   :  { %670 = dma.done.wait [#allocation7], 128  }
  0x3d   :  { %671 = vsyncadd [#allocation7], 4294967168 }
  0x3e   :  { %672 = dma.done.wait [#allocation9], 896  }
  0x3f   :  { %673 = vsyncadd [#allocation9], 4294966400 }
  0x40   :  { %674 = dma.done.wait [#allocation12], 512  }
  0x41   :  { %675 = vsyncadd [#allocation12], 4294966784  ;;  %vm123_vm0 = vcmask 130048   ;;  %v690_v0 = vmov 0.0   ;;  %vm691_vm1 = vmmov 0   ;;  %v554_v1 = vld [vmem:[#allocation8] sm:$0xff]  }
  0x42   :  { %493 = vmatprep.subr.bf16.mxu0 %v690_v0  ;;  %495 = vmatprep.mubr.msk.bf16.mxu0 %vm691_vm1, %v690_v0  ;;  %359 = vst.msk [vmem:[#allocation3] sm:$0xff] %vm123_vm0, %v690_v0  ;;  %v106_v2 = vld [vmem:[#allocation10] sm:$0xff]  ;;  %v107_v3 = vld [vmem:[#allocation10 + $0x8] sm:$0xff]  ;;  %v108_v5 = vld [vmem:[#allocation10 + $0x10] sm:$0xff]  ;;  %s676_s15 = smov 0  }
  0x43   :  { %507 = vmatprep.subr.bf16.mxu1 %v690_v0  ;;  %509 = vmatprep.mubr.msk.bf16.mxu1 %vm691_vm1, %v690_v0  ;;  %v112_v4 = vpack.c.bf16 %v107_v3, %v106_v2  ;;  %v109_v6 = vld [vmem:[#allocation10 + $0x18] sm:$0xff]  ;;  %v110_v8 = vld [vmem:[#allocation10 + $0x20] sm:$0xff]  ;;  %v111_v9 = vld [vmem:[#allocation10 + $0x28] sm:$0xff] }
  0x44   :  { %494 = vmatpush3.bf16.msra.mxu0 %v554_v1  ;;  %v113_v7 = vpack.c.bf16 %v109_v6, %v108_v5  ;;  %v114_v10 = vpack.c.bf16 %v111_v9, %v110_v8  ;;  %v555_v16 = vld [vmem:[#allocation6] sm:$0xff]  }
  0x47   :  { %496 = vmatmul.mubr.msk.bf16.vlgmr.msra.gmra.mxu0 %vm123_vm0, %v112_v4 }
  0x48   :  { %499 = vmatprep.mubr.msk.bf16.mxu0 %vm691_vm1, %v690_v0 }
  0x4f   :  { %500 = vmatmul.mubr.msk.bf16.gmra.mxu0 %vm123_vm0, %v113_v7 }
  0x50   :  { %503 = vmatprep.mubr.msk.bf16.mxu0 %vm691_vm1, %v690_v0 }
  0x57   :  { %504 = vmatmul.mubr.msk.bf16.gmra.mxu0 %vm123_vm0, %v114_v10 }
 0x107   :  { %v167_v11 = vpop.f32.mrf.mxu0 }
 0x109   :  { %v497_v12 = vpop.f32.mrf.mxu0 }
 0x10b   :  { %v170_v13 = vpop.f32.mrf.mxu0 }
 0x10c   :  { %v192_v14 = vpack.c.bf16 %v170_v13, %v167_v11 }
 0x10d   :  { %v498_v15 = vpop.f32.mrf.mxu0 }
 0x10e   :  { %508 = vmatpush3.bf16.msra.mxu1 %v192_v14 }
 0x10f   :  { %v175_v17 = vpop.f32.mrf.mxu0  ;;  %513 = vmatprep.subr.bf16.mxu1 %v690_v0 }
 0x111   :  { %v501_v18 = vpop.f32.mrf.mxu0  ;;  %510 = vmatmul.mubr.msk.bf16.vlgmr.msra.gmra.mxu1 %vm123_vm0, %v555_v16 }
 0x112   :  { %515 = vmatprep.mubr.msk.bf16.mxu1 %vm691_vm1, %v690_v0 }
 0x113   :  { %v178_v19 = vpop.f32.mrf.mxu0 }
 0x114   :  { %v248_v20 = vpack.c.bf16 %v178_v19, %v175_v17 }
 0x115   :  { %v502_v21 = vpop.f32.mrf.mxu0 }
 0x116   :  { %514 = vmatpush3.bf16.msra.mxu1 %v248_v20 }
 0x117   :  { %v183_v22 = vpop.f32.mrf.mxu0  ;;  %519 = vmatprep.subr.bf16.mxu1 %v690_v0 }
 0x119   :  { %v505_v23 = vpop.f32.mrf.mxu0  ;;  %516 = vmatmul.mubr.msk.bf16.vlgmr.msra.gmra.mxu1 %vm123_vm0, %v555_v16 }
 0x11a   :  { %521 = vmatprep.mubr.msk.bf16.mxu1 %vm691_vm1, %v690_v0 }
 0x11b   :  { %v186_v24 = vpop.f32.mrf.mxu0 }
 0x11c   :  { %v296_v25 = vpack.c.bf16 %v186_v24, %v183_v22 }
 0x11d   :  { %v506_v26 = vpop.f32.mrf.mxu0 }
 0x11e   :  { %520 = vmatpush3.bf16.msra.mxu1 %v296_v25 }
 0x121   :  { %522 = vmatmul.mubr.msk.bf16.vlgmr.msra.gmra.mxu1 %vm123_vm0, %v555_v16 }
 0x1d1   :  { %v237_v27 = vpop.f32.mrf.mxu1 }
 0x1d2   :  { %353 = vst [vmem:[%s815_s6] sm:$0xff] %v237_v27 }
 0x1d3   :  { %v511_v28 = vpop.f32.mrf.mxu1 }
 0x1d5   :  { %v240_v29 = vpop.f32.mrf.mxu1 }
 0x1d6   :  { %356 = vst [vmem:[%s815_s6 + $0x18] sm:$0xff] %v240_v29 }
 0x1d7   :  { %v512_v30 = vpop.f32.mrf.mxu1 }
 0x1d9   :  { %v285_v31 = vpop.f32.mrf.mxu1 }
 0x1da   :  { %354 = vst [vmem:[%s815_s6 + $0x8] sm:$0xff] %v285_v31 }
 0x1db   :  { %v517_v32 = vpop.f32.mrf.mxu1 }
 0x1dd   :  { %v288_v33 = vpop.f32.mrf.mxu1 }
 0x1de   :  { %357 = vst [vmem:[%s815_s6 + $0x20] sm:$0xff] %v288_v33 }
 0x1df   :  { %v518_v34 = vpop.f32.mrf.mxu1 }
 0x1e1   :  { %v333_v35 = vpop.f32.mrf.mxu1 }
 0x1e2   :  { %355 = vst [vmem:[%s815_s6 + $0x10] sm:$0xff] %v333_v35 }
 0x1e3   :  { %v523_v36 = vpop.f32.mrf.mxu1 }
 0x1e5   :  { %v336_v37 = vpop.f32.mrf.mxu1 }
 0x1e6   :  { %358 = vst [vmem:[%s815_s6 + $0x28] sm:$0xff] %v336_v37 }
 0x1e7   :  { %v524_v38 = vpop.f32.mrf.mxu1 }
 0x1e8 LB: > { %s368_s16 = sld [smem:[#allocation5 + %s678_s15]]  ;;  %vm373_vm2 = vcmask 122880   ;;  %s372_s18 = scalar_lea.vmem [#allocation3], %s678_s15  ;;  %s678_s15 = sphi %s676_s15, %s365_s15  }
 0x1e9   : > { %s365_s15 = sadd.s32 1, %s678_s15  }
 0x1ea   : > { %p362_p11 = scmp.ge.s32.totalorder %s365_s15, 8  }
 0x1eb   :  { %525 = vmatprep.subr.mxu0 (%p362_p11), %v690_v0  ;;  %v377_v41 = vld [vmem:[#allocation11 + $0x8] sm:$0xff] (%p362_p11)  ;;  %v376_v42 = vld [vmem:[#allocation11] sm:$0xff] (%p362_p11)  ;;  %529 = vmatprep.mubr.msk.f32.mxu0 (%p362_p11), %vm691_vm1, %v690_v0 }
 0x1ec   :  { %526 = vmatpush3.msra.mxu0 (%p362_p11), %v377_v41 }
 0x1ed   :  { %527 = vmatprep.subr.mxu0 (%p362_p11), %v690_v0 }
 0x1ee   : > { %s369_s17 = scalar_lea.vmem [#allocation13], %s368_s16  ;;  %364 = sbr.rel (!%p362_p11) target bundleno = 488 (0x1e8), region = 85  ;;  %528 = vmatpush3.msra.mxu0 (%p362_p11), %v376_v42 }
 0x1ef   : > { %v370_v39 = vld [vmem:[%s369_s17] sm:$0x1] }
 0x1f0   : > { %v371_v40 = vcvt.s32.f32 %v370_v39 }
 0x1f2   : > { %374 = vst.msk [vmem:[%s372_s18] sm:$0x1] %vm373_vm2, %v371_v40 }
 0x1f9   :  { %v375_v43 = vld [vmem:[#allocation3] sm:$0xff] }
 0x1fa   :  { %530 = vmatmul.mubr.msk.f32.vlgmr.msra.gmra.mxu0 %vm123_vm0, %v375_v43 }
 0x2ba   :  { %v447_v44 = vpop.f32.mrf.mxu0 }
 0x2bb   :  { %v532_v45 = vtrunc.f32 %v447_v44 }
 0x2bc   :  { %v531_v46 = vpop.f32.mrf.mxu0 }
 0x2bd   :  { %v533_v47 = vcvt.f32.s32 %v532_v45 }
 0x2bf   :  { %452 = vst [vmem:[%s816_s7] sm:$0xff] %v533_v47 }
 0x2c0   :  { %461 = vsyncpa [#allocation7], 1 }
 0x2c1   :  { %462 = vsyncpa [#allocation9], 1 }
 0x2c2   :  { %463 = vsyncpa [#allocation12], 1 }

</bundles_post_ra>
